<compile_context>
chip_gen: v7x
topology: tpu7x:2x2x1
jax: 0.10.0
libtpu: 0.0.40
codegen_flags: <defaults>
</compile_context>

<pallas_src>
import functools

import jax
import jax.numpy as jnp
from jax.experimental import pallas as pl
from jax.experimental.pallas import tpu as pltpu


def _round_up(n, m):
    return ((n + m - 1) // m) * m


def _vmem_capacity_bytes():
    """Generation-aware VMEM size (128 MiB v5e/v6e, 64 MiB per-core v7x)."""
    try:
        return int(pltpu.get_tpu_info().vmem_capacity_bytes)
    except Exception:
        return 64 << 20  # conservative fallback (v7x per-core size)


_SINGLE_BUFFER_OK = None


def _single_buffer_supported():
    """Probe once (eagerly) whether pipeline_mode=pl.Buffered(1) lowers on this
    jax/libtpu; if not, fall back to default double-buffered weights."""
    global _SINGLE_BUFFER_OK
    if _SINGLE_BUFFER_OK is None:
        try:
            def _probe(x_ref, o_ref):
                o_ref[...] = x_ref[...] + 1.0

            out = pl.pallas_call(
                _probe,
                out_shape=jax.ShapeDtypeStruct((8, 128), jnp.float32),
                grid=(2,),
                in_specs=[pl.BlockSpec((8, 128), lambda i: (0, 0),
                                       pipeline_mode=pl.Buffered(1))],
                out_specs=pl.BlockSpec((8, 128), lambda i: (0, 0)),
            )(jnp.zeros((8, 128), jnp.float32))
            jax.block_until_ready(out)
            _SINGLE_BUFFER_OK = bool(jnp.all(out == 1.0))
        except Exception:
            _SINGLE_BUFFER_OK = False
    return _SINGLE_BUFFER_OK


# ----------------------------------------------------------------------------
# Kernels
# ----------------------------------------------------------------------------
def _fused_kernel(x_ref, w1t_ref, b1_ref, w2t_ref, b2_ref, y_ref):
    # linear1 + ReLU: MXU matmul with f32 accumulation; bias + clamp on the VPU.
    h = jnp.dot(x_ref[...], w1t_ref[...], preferred_element_type=jnp.float32)
    h = jnp.maximum(h + b1_ref[...], 0.0)
    # linear2: hidden activation never leaves VMEM/vregs.
    # (astype is a no-op for f32 weights; explicit for the bf16 option.)
    y = jnp.dot(h.astype(w2t_ref.dtype), w2t_ref[...],
                preferred_element_type=jnp.float32)
    y_ref[...] = (y + b2_ref[...]).astype(y_ref.dtype)


def _ktiled_kernel(x_ref, w1t_ref, b1_ref, w2t_ref, b2_ref, y_ref, acc_ref):
    # Hidden dim H tiled along grid axis 1; partial products accumulate in an
    # f32 VMEM scratch, output written once on the last H block.
    k = pl.program_id(1)

    @pl.when(k == 0)
    def _():
        acc_ref[...] = jnp.zeros_like(acc_ref)

    h = jnp.dot(x_ref[...], w1t_ref[...], preferred_element_type=jnp.float32)
    h = jnp.maximum(h + b1_ref[...], 0.0)
    acc_ref[...] += jnp.dot(h.astype(w2t_ref.dtype), w2t_ref[...],
                            preferred_element_type=jnp.float32)

    @pl.when(k == pl.num_programs(1) - 1)
    def _():
        y_ref[...] = (acc_ref[...] + b2_ref[...]).astype(y_ref.dtype)


# ----------------------------------------------------------------------------
# Forward (operates on pre-padded parameters; only x is padded per call)
# ----------------------------------------------------------------------------
def _pick_tm(n, itemsize, d_in_p, d_out_p, stream_budget):
    # dtype-aware sublane rounding: 8 rows (f32), 16 (bf16/f16), 32 (int8/fp8).
    sub = 8 if itemsize >= 4 else (16 if itemsize == 2 else 32)
    if n <= 256:
        return _round_up(n, sub)
    # Large batches: biggest streamed tile that fits and keeps >= 2 grid steps.
    for tm in (512, 256):
        if n >= 2 * tm and 2 * itemsize * tm * (d_in_p + d_out_p) <= stream_budget:
            return tm
    return 256


def _forward_padded(x, w1t, b1r, w2t, b2r, *, d_in, d_out,
                    single_buffer, vmem_cap, force_k_tiling):
    x = x.astype(w1t.dtype)
    dt = w1t.dtype
    N = x.shape[0]
    D_in_p, H_p = w1t.shape
    D_out_p = w2t.shape[1]
    itemsize = jnp.dtype(dt).itemsize

    # Generation-aware scoped-VMEM limit: capacity minus headroom.
    vmem_limit = int(min(max(vmem_cap - (16 << 20), 32 << 20), 128 << 20))
    budget = vmem_limit - (8 << 20)  # extra headroom for compiler scratch

    weight_bufs = 1 if single_buffer else 2
    weight_bytes = (weight_bufs * itemsize * (D_in_p * H_p + H_p * D_out_p)
                    + 2 * itemsize * (H_p + D_out_p))

    tm = _pick_tm(N, itemsize, D_in_p, D_out_p,
                  max(budget - weight_bytes, budget // 4))
    N_p = _round_up(N, tm)

    # Per-call work is only the x row/col pad (weights were padded at prep).
    if N_p == N and D_in_p == d_in:
        x_p = x
    else:
        x_p = jnp.zeros((N_p, D_in_p), dt).at[:N, :d_in].set(x)

    stream_bytes = 2 * itemsize * tm * (D_in_p + D_out_p)
    cost = pl.CostEstimate(
        flops=2 * N_p * (D_in_p * H_p + H_p * D_out_p),
        transcendentals=0,
        bytes_accessed=itemsize * (N_p * D_in_p + D_in_p * H_p + H_p
                                   + H_p * D_out_p + D_out_p + N_p * D_out_p))

    def const_spec(shape, imap):
        # Constant-index operand: single-buffer it when supported.
        if single_buffer:
            return pl.BlockSpec(shape, imap, pipeline_mode=pl.Buffered(1))
        return pl.BlockSpec(shape, imap)

    n_rows = N_p // tm
    use_resident = (not force_k_tiling) and (weight_bytes + stream_bytes <= budget)

    if use_resident:
        # Small-batch path: split output columns so both v7x TensorCores get
        # work (no effect on single-TC v5e/v6e beyond smaller W2 tiles).
        n_cols = 2 if (n_rows == 1 and D_out_p >= 256
                       and (D_out_p // 128) % 2 == 0) else 1
        tn = D_out_p // n_cols
        if n_cols == 1:
            w2_spec = const_spec((H_p, tn), lambda i, j: (0, j))
        else:
            w2_spec = pl.BlockSpec((H_p, tn), lambda i, j: (0, j))
        y_p = pl.pallas_call(
            _fused_kernel,
            out_shape=jax.ShapeDtypeStruct((N_p, D_out_p), dt),
            grid_spec=pltpu.PrefetchScalarGridSpec(
                num_scalar_prefetch=0,
                grid=(n_rows, n_cols),
                in_specs=[
                    pl.BlockSpec((tm, D_in_p), lambda i, j: (i, 0)),  # x (streamed)
                    const_spec((D_in_p, H_p), lambda i, j: (0, 0)),   # W1^T (resident)
                    pl.BlockSpec((1, H_p), lambda i, j: (0, 0)),      # b1
                    w2_spec,                                          # W2^T
                    pl.BlockSpec((1, tn), lambda i, j: (0, j)),       # b2
                ],
                out_specs=pl.BlockSpec((tm, tn), lambda i, j: (i, j)),
            ),
            compiler_params=pltpu.CompilerParams(
                dimension_semantics=("parallel", "parallel"),
                vmem_limit_bytes=vmem_limit),
            cost_estimate=cost,
        )(x_p, w1t, b1r, w2t, b2r)
    else:
        # K-tiled fallback: stream W1^T column blocks / W2^T row blocks over
        # the hidden dim; accumulate in f32 scratch.
        acc_bytes = 4 * tm * D_out_p
        th = 128
        for cand in (1024, 512, 256, 128):
            if H_p % cand:
                continue
            per_step = 2 * itemsize * cand * (D_in_p + D_out_p + 1)
            if per_step + stream_bytes + acc_bytes <= budget:
                th = cand
                break
        # TODO(synk): for extreme D_in/D_out that alone blow the VMEM budget,
        # also tile the D_in reduction and the D_out output columns.
        y_p = pl.pallas_call(
            _ktiled_kernel,
            out_shape=jax.ShapeDtypeStruct((N_p, D_out_p), dt),
            grid_spec=pltpu.PrefetchScalarGridSpec(
                num_scalar_prefetch=0,
                grid=(n_rows, H_p // th),
                in_specs=[
                    pl.BlockSpec((tm, D_in_p), lambda i, k: (i, 0)),   # x
                    pl.BlockSpec((D_in_p, th), lambda i, k: (0, k)),   # W1^T block
                    pl.BlockSpec((1, th), lambda i, k: (0, k)),        # b1 block
                    pl.BlockSpec((th, D_out_p), lambda i, k: (k, 0)),  # W2^T block
                    pl.BlockSpec((1, D_out_p), lambda i, k: (0, 0)),   # b2
                ],
                out_specs=pl.BlockSpec((tm, D_out_p), lambda i, k: (i, 0)),
                scratch_shapes=[pltpu.VMEM((tm, D_out_p), jnp.float32)],
            ),
            compiler_params=pltpu.CompilerParams(
                dimension_semantics=("parallel", "arbitrary"),
                vmem_limit_bytes=vmem_limit),
            cost_estimate=cost,
        )(x_p, w1t, b1r, w2t, b2r)

    if N_p == N and D_out_p == d_out:
        return y_p
    return y_p[:N, :d_out]


class TwoLayerNetTPU:
    """Pallas-TPU Twolayernet: y = relu(x @ W1^T + b1) @ W2^T + b2.

    Weights/biases are transposed and zero-padded to lane-aligned (128-multiple)
    shapes ONCE here, not per forward call. Pass dtype=jnp.bfloat16 to halve
    weight VMEM/HBM traffic (f32 accumulation kept in-kernel); default keeps the
    original f32 semantics of the PyTorch module.
    """

    def __init__(self, w1, b1, w2, b2, *, dtype=None, force_k_tiling=False):
        dt = jnp.dtype(dtype) if dtype is not None else jnp.asarray(w1).dtype
        H, D_in = w1.shape
        D_out = w2.shape[0]
        D_in_p = _round_up(D_in, 128)
        H_p = _round_up(H, 128)
        D_out_p = _round_up(D_out, 128)
        # Zero padding preserves semantics: padded hidden columns see zero
        # weights + zero bias -> relu(0)=0; padded output cols are sliced off.
        self.w1t = jnp.zeros((D_in_p, H_p), dt).at[:D_in, :H].set(
            jnp.asarray(w1, dt).T)
        self.w2t = jnp.zeros((H_p, D_out_p), dt).at[:H, :D_out].set(
            jnp.asarray(w2, dt).T)
        self.b1 = jnp.zeros((1, H_p), dt).at[0, :H].set(jnp.asarray(b1, dt))
        self.b2 = jnp.zeros((1, D_out_p), dt).at[0, :D_out].set(jnp.asarray(b2, dt))
        self.dtype = dt
        self._fwd = jax.jit(functools.partial(
            _forward_padded,
            d_in=D_in, d_out=D_out,
            single_buffer=_single_buffer_supported(),
            vmem_cap=_vmem_capacity_bytes(),
            force_k_tiling=force_k_tiling))

    def __call__(self, x):
        return self._fwd(x, self.w1t, self.b1, self.w2t, self.b2)


# ----------------------------------------------------------------------------
# Self-test
# ----------------------------------------------------------------------------
if __name__ == "__main__":
    key = jax.random.PRNGKey(0)

    def init_linear(k, out_f, in_f):
        # Mirrors torch.nn.Linear's U(-1/sqrt(fan_in), 1/sqrt(fan_in)) init.
        kw, kb = jax.random.split(k)
        bound = 1.0 / float(in_f) ** 0.5
        w = jax.random.uniform(kw, (out_f, in_f), jnp.float32, -bound, bound)
        b = jax.random.uniform(kb, (out_f,), jnp.float32, -bound, bound)
        return w, b

    def reference(x, w1, b1, w2, b2):
        h = jnp.maximum(x @ w1.T + b1, 0.0)
        return h @ w2.T + b2

    # --- Test 1: small module shapes (resident-weight fused path) -----------
    N, D_in, H, D_out = 8, 32, 64, 16
    kx, k1, k2, key = jax.random.split(key, 4)
    x = jax.random.normal(kx, (N, D_in), jnp.float32)
    w1, b1 = init_linear(k1, H, D_in)
    w2, b2 = init_linear(k2, D_out, H)
    net = TwoLayerNetTPU(w1, b1, w2, b2)
    y = jax.block_until_ready(net(x))
    assert y.shape == (N, D_out)
    assert jnp.allclose(y, reference(x, w1, b1, w2, b2), atol=1e-4, rtol=1e-4)

    # --- Test 2: small batch + wide output (2-column split path) ------------
    N2, D_in2, H2, D_out2 = 4, 96, 192, 256
    kx, k1, k2, key = jax.random.split(key, 4)
    x2 = jax.random.normal(kx, (N2, D_in2), jnp.float32)
    w1_2, b1_2 = init_linear(k1, H2, D_in2)
    w2_2, b2_2 = init_linear(k2, D_out2, H2)
    net2 = TwoLayerNetTPU(w1_2, b1_2, w2_2, b2_2)
    y2 = jax.block_until_ready(net2(x2))
    assert jnp.allclose(y2, reference(x2, w1_2, b1_2, w2_2, b2_2),
                        atol=1e-3, rtol=1e-3)

    # --- Test 3: forced hidden-dim (K) tiling fallback path ------------------
    N3, D_in3, H3, D_out3 = 40, 200, 384, 72
    kx, k1, k2, key = jax.random.split(key, 4)
    x3 = jax.random.normal(kx, (N3, D_in3), jnp.float32)
    w1_3, b1_3 = init_linear(k1, H3, D_in3)
    w2_3, b2_3 = init_linear(k2, D_out3, H3)
    net3 = TwoLayerNetTPU(w1_3, b1_3, w2_3, b2_3, force_k_tiling=True)
    y3 = jax.block_until_ready(net3(x3))
    assert jnp.allclose(y3, reference(x3, w1_3, b1_3, w2_3, b2_3),
                        atol=1e-3, rtol=1e-3)

    print("KERNEL_OK")
</pallas_src>

<mosaic_0001>
module attributes {stable_mosaic.version = 11 : i64} {
  func.func @_probe(%arg0: i32, %arg1: memref<8x128xf32, #tpu.memory_space<vmem>>, %arg2: memref<8x128xf32, #tpu.memory_space<vmem>>) attributes {dimension_semantics = [#tpu.dimension_semantics<arbitrary>], iteration_bounds = array<i64: 2>, scalar_prefetch = 0 : i64, scratch_operands = 0 : i64, tpu.core_type = #tpu.core_type<tc>, window_params = [{pipeline_mode = #tpu.pipeline_mode<synchronous>, transform_indices = @transform_0, window_bounds = array<i64: 8, 128>}, {pipeline_mode = #tpu.pipeline_mode<synchronous>, transform_indices = @transform_1, window_bounds = array<i64: 8, 128>}]} {
    %c0 = arith.constant 0 : index
    %c0_0 = arith.constant 0 : index
    %0 = vector.load %arg1[%c0, %c0_0] : memref<8x128xf32, #tpu.memory_space<vmem>>, vector<8x128xf32>
    %cst = arith.constant 1.000000e+00 : f32
    %1 = vector.broadcast %cst : f32 to vector<8x128xf32>
    %2 = arith.addf %0, %1 : vector<8x128xf32>
    %c0_1 = arith.constant 0 : index
    %c0_2 = arith.constant 0 : index
    %3 = vector.load %arg2[%c0_1, %c0_2] : memref<8x128xf32, #tpu.memory_space<vmem>>, vector<8x128xf32>
    tpu.vector_store %arg2[%c0_1, %c0_2], %2 {strides = array<i32>} : memref<8x128xf32, #tpu.memory_space<vmem>>, vector<8x128xf32>,
    return
  }
  func.func @transform_0(%arg0: i32) -> (i32, i32) {
    %c0_i32 = arith.constant 0 : i32
    %c0_i32_0 = arith.constant 0 : i32
    %c0_i32_1 = arith.constant 0 : i32
    return %c0_i32, %c0_i32_0 : i32, i32
  }
  func.func @transform_1(%arg0: i32) -> (i32, i32) {
    %c0_i32 = arith.constant 0 : i32
    %c0_i32_0 = arith.constant 0 : i32
    %c0_i32_1 = arith.constant 0 : i32
    return %c0_i32, %c0_i32_0 : i32, i32
  }
}

module attributes {stable_mosaic.version = 11 : i64} {
  func.func @_fused_kernel(%arg0: i32, %arg1: i32, %arg2: memref<8x128xf32, #tpu.memory_space<vmem>>, %arg3: memref<128x128xf32, #tpu.memory_space<vmem>>, %arg4: memref<1x128xf32, #tpu.memory_space<vmem>>, %arg5: memref<128x128xf32, #tpu.memory_space<vmem>>, %arg6: memref<1x128xf32, #tpu.memory_space<vmem>>, %arg7: memref<8x128xf32, #tpu.memory_space<vmem>>) attributes {dimension_semantics = [#tpu.dimension_semantics<parallel>, #tpu.dimension_semantics<parallel>], iteration_bounds = array<i64: 1, 1>, scalar_prefetch = 0 : i64, scratch_operands = 0 : i64, tpu.core_type = #tpu.core_type<tc>, window_params = [{transform_indices = @transform_0, window_bounds = array<i64: 8, 128>}, {pipeline_mode = #tpu.pipeline_mode<synchronous>, transform_indices = @transform_1, window_bounds = array<i64: 128, 128>}, {pipeline_mode = #tpu.pipeline_mode<synchronous>, transform_indices = @transform_2, window_bounds = array<i64: 1, 128>}, {transform_indices = @transform_3, window_bounds = array<i64: 128, 128>}, {transform_indices = @transform_4, window_bounds = array<i64: 1, 128>}, {transform_indices = @transform_5, window_bounds = array<i64: 8, 128>}]} {
    %c0 = arith.constant 0 : index
    %c0_0 = arith.constant 0 : index
    %0 = vector.load %arg2[%c0, %c0_0] : memref<8x128xf32, #tpu.memory_space<vmem>>, vector<8x128xf32>
    %c0_1 = arith.constant 0 : index
    %c0_2 = arith.constant 0 : index
    %1 = vector.load %arg3[%c0_1, %c0_2] : memref<128x128xf32, #tpu.memory_space<vmem>>, vector<128x128xf32>
    %cst = arith.constant dense<0.000000e+00> : vector<8x128xf32>
    %2 = tpu.matmul %0, %1, %cst {dimension_numbers = #tpu.dot_dimension_numbers<[1], [0], [0], [1], [0, 0, 1, 1], [], []>} : vector<8x128xf32>, vector<128x128xf32>, vector<8x128xf32> -> vector<8x128xf32>
    %c0_3 = arith.constant 0 : index
    %c0_4 = arith.constant 0 : index
    %3 = vector.load %arg4[%c0_3, %c0_4] : memref<1x128xf32, #tpu.memory_space<vmem>>, vector<1x128xf32>
    %4 = vector.broadcast %3 : vector<1x128xf32> to vector<8x128xf32>
    %5 = arith.addf %2, %4 : vector<8x128xf32>
    %cst_5 = arith.constant 0.000000e+00 : f32
    %6 = vector.broadcast %cst_5 : f32 to vector<8x128xf32>
    %7 = arith.maximumf %5, %6 : vector<8x128xf32>
    %c0_6 = arith.constant 0 : index
    %c0_7 = arith.constant 0 : index
    %8 = vector.load %arg5[%c0_6, %c0_7] : memref<128x128xf32, #tpu.memory_space<vmem>>, vector<128x128xf32>
    %cst_8 = arith.constant dense<0.000000e+00> : vector<8x128xf32>
    %9 = tpu.matmul %7, %8, %cst_8 {dimension_numbers = #tpu.dot_dimension_numbers<[1], [0], [0], [1], [0, 0, 1, 1], [], []>} : vector<8x128xf32>, vector<128x128xf32>, vector<8x128xf32> -> vector<8x128xf32>
    %c0_9 = arith.constant 0 : index
    %c0_10 = arith.constant 0 : index
    %10 = vector.load %arg6[%c0_9, %c0_10] : memref<1x128xf32, #tpu.memory_space<vmem>>, vector<1x128xf32>
    %11 = vector.broadcast %10 : vector<1x128xf32> to vector<8x128xf32>
    %12 = arith.addf %9, %11 : vector<8x128xf32>
    %c0_11 = arith.constant 0 : index
    %c0_12 = arith.constant 0 : index
    %13 = vector.load %arg7[%c0_11, %c0_12] : memref<8x128xf32, #tpu.memory_space<vmem>>, vector<8x128xf32>
    tpu.vector_store %arg7[%c0_11, %c0_12], %12 {strides = array<i32>} : memref<8x128xf32, #tpu.memory_space<vmem>>, vector<8x128xf32>,
    return
  }
  func.func @transform_0(%arg0: i32, %arg1: i32) -> (i32, i32) {
    %c0_i32 = arith.constant 0 : i32
    %c0_i32_0 = arith.constant 0 : i32
    return %arg0, %c0_i32 : i32, i32
  }
  func.func @transform_1(%arg0: i32, %arg1: i32) -> (i32, i32) {
    %c0_i32 = arith.constant 0 : i32
    %c0_i32_0 = arith.constant 0 : i32
    %c0_i32_1 = arith.constant 0 : i32
    return %c0_i32, %c0_i32_0 : i32, i32
  }
  func.func @transform_2(%arg0: i32, %arg1: i32) -> (i32, i32) {
    %c0_i32 = arith.constant 0 : i32
    %c0_i32_0 = arith.constant 0 : i32
    %c0_i32_1 = arith.constant 0 : i32
    return %c0_i32, %c0_i32_0 : i32, i32
  }
  func.func @transform_3(%arg0: i32, %arg1: i32) -> (i32, i32) {
    %c0_i32 = arith.constant 0 : i32
    %c0_i32_0 = arith.constant 0 : i32
    return %c0_i32, %arg1 : i32, i32
  }
  func.func @transform_4(%arg0: i32, %arg1: i32) -> (i32, i32) {
    %c0_i32 = arith.constant 0 : i32
    %c0_i32_0 = arith.constant 0 : i32
    return %c0_i32, %arg1 : i32, i32
  }
  func.func @transform_5(%arg0: i32, %arg1: i32) -> (i32, i32) {
    %c0_i32 = arith.constant 0 : i32
    return %arg0, %arg1 : i32, i32
  }
}

</mosaic_0001>

<bundles_post_ra>
// kernel: tpu_custom_call.1
= control target key start
LH: loop header
LB: loop body
LE: loop exit
PB: predicated region body
PF: predicated region fallthrough
CT: control target
= control target key end

     0   :  { %6 = vsyncpa [#allocation3], 0  ;;  %s341_s0 = inlined_call_operand.hbm [shape: f32[8,128], index: 0, kind: input, shape index: {}]   ;;  %s342_s1 = inlined_call_operand.hbm [shape: f32[8,128], index: 1, kind: output, shape index: {}]  }
   0x1   :  { %7 = vsyncpa [#allocation4], 0  ;;  %s262_s6 = smov 0  }
   0x2 LB: > { %s145_s7 = sadd.s32 4294967295, %s248_s6   ;;  %p146_p0 = scmp.ge.s32.totalorder %s248_s6, 1  ;;  %s248_s6 = sphi %s262_s6, %s13_s6  }
   0x3   : > { %p60_p1 = scmp.lt.s32.totalorder %s248_s6, 3  ;;  %p276_p3 = scmp.eq.s32.totalorder %s145_s7, 0 }
   0x4   : > { %s250_s10 = smov [#allocation2]   ;;  %s180_s15 = scalar_lea.hbm %s341_s0, 128 }
   0x5   : > { %p270_p2 = pnand %p146_p0, %p60_p1  ;;  %s73_s11 = sshll.u32 %s250_s10, 4  ;;  %s74_s11 = int_to_ptr.vmem [resolvable:$true] %s73_s11 }
   0x6   : > { %s347_s9 = scalar_select %p276_p3, 1, 0 }
   0x7   : > { %s346_s8 = scalar_select %p270_p2, 1, 0 }
   0x8   : > { %p162_p4 = pneg %p270_p2  ;;  %p181_p6 = scmp.ne.s32.totalorder %s341_s0, %s180_s15 }
   0x9   : > { %p187_p10 = scmp.lt.u32.totalorder %s180_s15, %s341_s0 }
   0xa   : > { %p284_p5 = pnand %p276_p3, %p162_p4 }
   0xc   : > { %p182_p7 = pneg %p284_p5 }
   0xe   : > { %p183_p8 = pnand %p182_p7, %p181_p6 }
  0x10   : > { %p184_p9 = pneg %p183_p8 }
  0x12   : > { %p189_p11 = pnand %p187_p10, %p184_p9 }
  0x14   : > { %192 = shalt.err (!%p189_p11)
}
  0x15   : > { %s193_s20 = scalar_lea.vmem %s74_s11, 128  ;;  %p201_p1 = scmp.lt.s32.totalorder %s74_s11, %s74_s11 }
  0x16   : > { %p194_p12 = scmp.ne.s32.totalorder %s74_s11, %s193_s20  ;;  %p202_p4 = scmp.lt.s32.totalorder %s193_s20, %s193_s20 }
  0x18   : > { %p196_p13 = pnand %p194_p12, %p182_p7  ;;  %p203_p3 = por %p202_p4, %p201_p1 }
  0x1a   : > { %p197_p0 = pneg %p196_p13 }
  0x1c   : > { %p204_p2 = pnand %p203_p3, %p197_p0 }
  0x1e   : > { %207 = shalt.err (!%p204_p2)
}
  0x1f   : > { %165 = dma.hbm_to_vmem [thread:$0]  (!%p284_p5), %s341_s0, 128, %s74_s11, [#allocation3]  }
  0x20   : > { %p349_p6 = scmp.ne.s32.totalorder %s346_s8, 0 }
  0x21   : > { %p350_p8 = scmp.ne.s32.totalorder (!%p349_p6), %s347_s9, 0 }
  0x22   : > { %86 = sbr.rel (%p349_p6) target bundleno = 67 (0x43), region = 24 }
  0x29   : > { %239 = dma.done.wait (%p350_p8), [#allocation3], 128  }
  0x2a   : > { %241 = vsyncadd (%p350_p8), [#allocation3], 4294967168  ;;  %s251_s23 = smov [#allocation5]   ;;  %v96_v0 = vld [vmem:[#allocation2] sm:$0xff]  ;;  %p312_p2 = scmp.eq.s32.totalorder %s145_s7, 1 }
  0x2b   : > { %s106_s24 = sshll.u32 %s251_s23, 4  ;;  %v97_v1 = vadd.f32 1.0, %v96_v0  ;;  %s107_s24 = int_to_ptr.vmem [resolvable:$true] %s106_s24 }
  0x2c   : > { %s208_s26 = scalar_lea.vmem %s107_s24, 128  ;;  %p215_p9 = scmp.lt.s32.totalorder %s107_s24, %s107_s24 }
  0x2d   : > { %98 = vst [vmem:[#allocation5] sm:$0xff] %v97_v1  ;;  %p209_p3 = scmp.ne.s32.totalorder %s107_s24, %s208_s26  ;;  %p216_p10 = scmp.lt.s32.totalorder %s208_s26, %s208_s26 }
  0x2f   : > { %p210_p5 = pnand %p209_p3, %p312_p2  ;;  %p217_p11 = por %p216_p10, %p215_p9 }
  0x31   : > { %p211_p7 = pneg %p210_p5 }
  0x33   : > { %p218_p12 = pnand %p217_p11, %p211_p7 }
  0x35   : > { %221 = shalt.err (!%p218_p12)
}
  0x36   : > { %s222_s29 = scalar_lea.hbm %s342_s1, 128 }
  0x37   : > { %p223_p13 = scmp.ne.s32.totalorder %s342_s1, %s222_s29  ;;  %p228_p4 = scmp.lt.u32.totalorder %s222_s29, %s342_s1 }
  0x39   : > { %p224_p0 = pnand %p223_p13, %p312_p2 }
  0x3b   : > { %p225_p1 = pneg %p224_p0 }
  0x3d   : > { %p230_p6 = pnand %p228_p4, %p225_p1 }
  0x3f   : > { %233 = shalt.err (!%p230_p6)
}
  0x40   : > { %159 = dma.vmem_to_hbm [thread:$0]  (%p312_p2), %s107_s24, 128, %s342_s1, [#allocation4]  }
  0x41   : > { %243 = dma.done.wait (%p312_p2), [#allocation4], 128  }
  0x42   : > { %245 = vsyncadd (%p312_p2), [#allocation4], 4294967168 }
  0x43 PF: > { %s13_s6 = sadd.s32 1, %s248_s6  }
  0x44   : > { %p10_p8 = scmp.ge.s32.totalorder %s13_s6, 4  }
  0x46   :  { %12 = sbr.rel (!%p10_p8) target bundleno = 2 (0x2), region = 53 }
  0x4d   :  { %119 = vsyncpa [#allocation3], 1 }
  0x4e   :  { %121 = vsyncpa [#allocation3 + $0x1], 1 }
  0x4f   :  { %122 = vsyncpa [#allocation4], 1 }
  0x50   :  { %124 = vsyncpa [#allocation4 + $0x1], 1 }

// kernel: _forward_padded.1
= control target key start
LH: loop header
LB: loop body
LE: loop exit
PB: predicated region body
PF: predicated region fallthrough
CT: control target
= control target key end

     0   :  { %10 = vsyncpa [#allocation3], 0  ;;  %s587_s0 = inlined_call_operand.vmem [shape: f32[8,128], index: 0, kind: input, shape index: {}]   ;;  %s588_s1 = inlined_call_operand.hbm [shape: f32[128,128], index: 1, kind: input, shape index: {}]   ;;  %s589_s2 = inlined_call_operand.vmem [shape: f32[1,128], index: 2, kind: input, shape index: {}]   ;;  %s590_s3 = inlined_call_operand.hbm [shape: f32[128,128], index: 3, kind: input, shape index: {}]   ;;  %s591_s4 = inlined_call_operand.vmem [shape: f32[1,128], index: 4, kind: input, shape index: {}]   ;;  %s592_s5 = inlined_call_operand.hbm [shape: f32[8,128], index: 5, kind: output, shape index: {}]  }
   0x1   :  { %11 = vsyncpa [#allocation6], 0 }
   0x2   :  { %12 = vsyncpa [#allocation4], 0  ;;  %s488_s18 = smov [#allocation2]   ;;  %s416_s22 = scalar_lea.hbm %s588_s1, 2048 }
   0x3   :  { %s20_s19 = sshll.u32 %s488_s18, 4  ;;  %p417_p0 = scmp.ne.s32.totalorder %s588_s1, %s416_s22  ;;  %s21_s19 = int_to_ptr.vmem [resolvable:$true] %s20_s19 }
   0x4   :  { %p420_p1 = scmp.lt.u32.totalorder %s416_s22, %s588_s1 }
   0x6   :  { %p422_p2 = pnand %p420_p1, %p417_p0 }
   0x8   :  { %425 = shalt.err (!%p422_p2)
}
   0x9   :  { %s426_s27 = scalar_lea.vmem %s21_s19, 2048  ;;  %p431_p4 = scmp.lt.s32.totalorder %s21_s19, %s21_s19 }
   0xa   :  { %p427_p3 = scmp.ne.s32.totalorder %s21_s19, %s426_s27  ;;  %p432_p5 = scmp.lt.s32.totalorder %s426_s27, %s426_s27 }
   0xc   :  { %p433_p6 = por %p432_p5, %p431_p4 }
   0xe   :  { %p434_p7 = pnand %p433_p6, %p427_p3 }
  0x10   :  { %437 = shalt.err (!%p434_p7)
}
  0x11   :  { %s489_s28 = smov 128   ;;  %s490_s29 = smov 8  }
  0x12   :  { %26 = dma.hbm_to_vmem [thread:$0]  %s588_s1, 2048, %s21_s19, [#allocation3], %s489_s28, %s489_s28, %s490_s29  }
  0x13   :  { %s491_s7 = smov [#allocation5]   ;;  %s438_s11 = scalar_lea.hbm %s590_s3, 2048 }
  0x14   :  { %s34_s8 = sshll.u32 %s491_s7, 4  ;;  %p439_p8 = scmp.ne.s32.totalorder %s590_s3, %s438_s11  ;;  %s35_s8 = int_to_ptr.vmem [resolvable:$true] %s34_s8 }
  0x15   :  { %p442_p9 = scmp.lt.u32.totalorder %s438_s11, %s590_s3 }
  0x17   :  { %p444_p10 = pnand %p442_p9, %p439_p8 }
  0x19   :  { %447 = shalt.err (!%p444_p10)
}
  0x1a   :  { %s448_s16 = scalar_lea.vmem %s35_s8, 2048  ;;  %p453_p12 = scmp.lt.s32.totalorder %s35_s8, %s35_s8 }
  0x1b   :  { %p449_p11 = scmp.ne.s32.totalorder %s35_s8, %s448_s16  ;;  %p454_p13 = scmp.lt.s32.totalorder %s448_s16, %s448_s16 }
  0x1d   :  { %p455_p0 = por %p454_p13, %p453_p12 }
  0x1f   :  { %p456_p1 = pnand %p455_p0, %p449_p11 }
  0x21   :  { %459 = shalt.err (!%p456_p1)
}
  0x22   :  { %40 = dma.hbm_to_vmem [thread:$0]  %s590_s3, 2048, %s35_s8, [#allocation6], %s489_s28, %s489_s28, %s490_s29  }
  0x23   :  { %482 = dma.done.wait [#allocation3], 2048  }
  0x24   :  { %483 = vsyncadd [#allocation3], 4294965248 }
  0x25   :  { %484 = dma.done.wait [#allocation6], 2048  }
  0x26   :  { %485 = vsyncadd [#allocation6], 4294965248  ;;  %v492_v0 = vmov 0.0|0.0   ;;  %vm493_vm0 = vmmov 0   ;;  %v494_v1 = vmov 0.0   ;;  %v50_v2 = vld [vmem:[#allocation2] sm:$0xff] }
  0x27   :  { %360 = vmatprep.subr.bf16.mxu0 %v492_v0  ;;  %322 = vmatprep.mubr.msk.f32.mxu0 %vm493_vm0, %v494_v1  ;;  %v51_v3 = vld [vmem:[#allocation2 + $0x8] sm:$0xff]  ;;  %v52_v4 = vld [vmem:[#allocation2 + $0x10] sm:$0xff]  ;;  %v53_v6 = vld [vmem:[#allocation2 + $0x18] sm:$0xff] }
  0x28   :  { %384 = vmatprep.subr.bf16.mxu1 %v492_v0  ;;  %357 = vmatprep.mubr.msk.f32.mxu1 %vm493_vm0, %v494_v1  ;;  %v361_v5 = vpack.c.bf16 %v51_v3, %v50_v2  ;;  %v364_v7 = vpack.c.bf16 %v53_v6, %v52_v4  ;;  %v54_v8 = vld [vmem:[#allocation2 + $0x20] sm:$0xff]  ;;  %v55_v9 = vld [vmem:[#allocation2 + $0x28] sm:$0xff]  ;;  %v146_v12 = vld [vmem:[#allocation5 + $0x10] sm:$0xff] }
  0x29   :  { %v144_v10 = vld [vmem:[#allocation5] sm:$0xff]  ;;  %v145_v11 = vld [vmem:[#allocation5 + $0x8] sm:$0xff]  ;;  %v147_v13 = vld [vmem:[#allocation5 + $0x18] sm:$0xff]  ;;  %v367_v14 = vpack.c.bf16 %v55_v9, %v54_v8 }
  0x2a   :  { %362 = vmatpush3.bf16.msra.mxu0 %v361_v5  ;;  %v385_v15 = vpack.c.bf16 %v145_v11, %v144_v10  ;;  %v56_v16 = vld [vmem:[#allocation2 + $0x30] sm:$0xff]  ;;  %v57_v17 = vld [vmem:[#allocation2 + $0x38] sm:$0xff]  ;;  %v388_v18 = vpack.c.bf16 %v147_v13, %v146_v12  ;;  %v148_v19 = vld [vmem:[#allocation5 + $0x20] sm:$0xff] }
  0x2b   :  { %363 = vmatprep.subr.bf16.mxu0 %v492_v0  ;;  %v149_v20 = vld [vmem:[#allocation5 + $0x28] sm:$0xff]  ;;  %v370_v21 = vpack.c.bf16 %v57_v17, %v56_v16  ;;  %v58_v22 = vld [vmem:[#allocation2 + $0x40] sm:$0xff]  ;;  %v150_v25 = vld [vmem:[#allocation5 + $0x30] sm:$0xff] }
  0x2c   :  { %386 = vmatpush3.bf16.msra.mxu1 %v385_v15  ;;  %v59_v23 = vld [vmem:[#allocation2 + $0x48] sm:$0xff]  ;;  %v391_v24 = vpack.c.bf16 %v149_v20, %v148_v19  ;;  %v151_v26 = vld [vmem:[#allocation5 + $0x38] sm:$0xff]  ;;  %v60_v28 = vld [vmem:[#allocation2 + $0x50] sm:$0xff] }
  0x2d   :  { %387 = vmatprep.subr.bf16.mxu1 %v492_v0  ;;  %v373_v27 = vpack.c.bf16 %v59_v23, %v58_v22  ;;  %v61_v29 = vld [vmem:[#allocation2 + $0x58] sm:$0xff]  ;;  %v394_v30 = vpack.c.bf16 %v151_v26, %v150_v25  ;;  %v152_v31 = vld [vmem:[#allocation5 + $0x40] sm:$0xff]  ;;  %v153_v32 = vld [vmem:[#allocation5 + $0x48] sm:$0xff] }
  0x2e   :  { %365 = vmatpush3.bf16.msra.mxu0 %v364_v7  ;;  %v376_v33 = vpack.c.bf16 %v61_v29, %v60_v28  ;;  %v62_v34 = vld [vmem:[#allocation2 + $0x60] sm:$0xff]  ;;  %v63_v35 = vld [vmem:[#allocation2 + $0x68] sm:$0xff]  ;;  %v397_v36 = vpack.c.bf16 %v153_v32, %v152_v31  ;;  %v154_v37 = vld [vmem:[#allocation5 + $0x50] sm:$0xff] }
  0x2f   :  { %366 = vmatprep.subr.bf16.mxu0 %v492_v0  ;;  %v155_v38 = vld [vmem:[#allocation5 + $0x58] sm:$0xff]  ;;  %v379_v39 = vpack.c.bf16 %v63_v35, %v62_v34  ;;  %v64_v40 = vld [vmem:[#allocation2 + $0x70] sm:$0xff]  ;;  %v156_v43 = vld [vmem:[#allocation5 + $0x60] sm:$0xff] }
  0x30   :  { %389 = vmatpush3.bf16.msra.mxu1 %v388_v18  ;;  %v65_v41 = vld [vmem:[#allocation2 + $0x78] sm:$0xff]  ;;  %v400_v42 = vpack.c.bf16 %v155_v38, %v154_v37  ;;  %v157_v44 = vld [vmem:[#allocation5 + $0x68] sm:$0xff]  ;;  %v49_v47 = vld [vmem:[%s587_s0] sm:$0xff]  ;;  %s495_s0 = smov [#allocation7]  }
  0x31   :  { %390 = vmatprep.subr.bf16.mxu1 %v492_v0  ;;  %v382_v45 = vpack.c.bf16 %v65_v41, %v64_v40  ;;  %v403_v46 = vpack.c.bf16 %v157_v44, %v156_v43  ;;  %v158_v48 = vld [vmem:[#allocation5 + $0x70] sm:$0xff]  ;;  %v159_v49 = vld [vmem:[#allocation5 + $0x78] sm:$0xff]  ;;  %v254_v51 = vld [vmem:[%s589_s2] ss:$0 sm:$0xff]  ;;  %s244_s23 = sshll.u32 %s495_s0, 4  ;;  %s245_s23 = int_to_ptr.vmem [resolvable:$true] %s244_s23 }
  0x32   :  { %368 = vmatpush3.bf16.msra.mxu0 %v367_v14  ;;  %v406_v50 = vpack.c.bf16 %v159_v49, %v158_v48  ;;  %v255_v56 = vld [vmem:[%s591_s4] ss:$0 sm:$0xff]  ;;  %s460_s24 = scalar_lea.vmem %s245_s23, 128  ;;  %p465_p3 = scmp.lt.s32.totalorder %s245_s23, %s245_s23 }
  0x33   :  { %369 = vmatprep.subr.bf16.mxu0 %v492_v0  ;;  %p461_p2 = scmp.ne.s32.totalorder %s245_s23, %s460_s24  ;;  %p466_p4 = scmp.lt.s32.totalorder %s460_s24, %s460_s24 }
  0x34   :  { %392 = vmatpush3.bf16.msra.mxu1 %v391_v24 }
  0x35   :  { %393 = vmatprep.subr.bf16.mxu1 %v492_v0  ;;  %p467_p5 = por %p466_p4, %p465_p3 }
  0x36   :  { %371 = vmatpush3.bf16.msra.mxu0 %v370_v21 }
  0x37   :  { %372 = vmatprep.subr.bf16.mxu0 %v492_v0  ;;  %p468_p6 = pnand %p467_p5, %p461_p2 }
  0x38   :  { %395 = vmatpush3.bf16.msra.mxu1 %v394_v30 }
  0x39   :  { %396 = vmatprep.subr.bf16.mxu1 %v492_v0 }
  0x3a   :  { %374 = vmatpush3.bf16.msra.mxu0 %v373_v27 }
  0x3b   :  { %375 = vmatprep.subr.bf16.mxu0 %v492_v0 }
  0x3c   :  { %398 = vmatpush3.bf16.msra.mxu1 %v397_v36 }
  0x3d   :  { %399 = vmatprep.subr.bf16.mxu1 %v492_v0 }
  0x3e   :  { %377 = vmatpush3.bf16.msra.mxu0 %v376_v33 }
  0x3f   :  { %378 = vmatprep.subr.bf16.mxu0 %v492_v0 }
  0x40   :  { %401 = vmatpush3.bf16.msra.mxu1 %v400_v42 }
  0x41   :  { %402 = vmatprep.subr.bf16.mxu1 %v492_v0 }
  0x42   :  { %380 = vmatpush3.bf16.msra.mxu0 %v379_v39 }
  0x43   :  { %381 = vmatprep.subr.bf16.mxu0 %v492_v0 }
  0x44   :  { %404 = vmatpush3.bf16.msra.mxu1 %v403_v46 }
  0x45   :  { %405 = vmatprep.subr.bf16.mxu1 %v492_v0 }
  0x46   :  { %383 = vmatpush3.bf16.msra.mxu0 %v382_v45 }
  0x48   :  { %407 = vmatpush3.bf16.msra.mxu1 %v406_v50 }
  0x49   :  { %323 = vmatmul.mubr.f32.vlgmr.msra.gmra.mrb[0].mxu0 %v49_v47 }
 0x11c   :  { %v139_v52 = vpop.f32.mrb[0].mxu0 }
 0x11d   :  { %v140_v53 = vadd.f32 %v254_v51, %v139_v52  ;;  %v324_v54 = vpop.f32.mrb[1].mxu0 }
 0x11f   :  { %v143_v55 = vmax.f32 %v140_v53, 0.0 }
 0x121   :  { %358 = vmatmul.mubr.f32.vlgmr.msra.gmra.mrb[0].mxu1 %v143_v55 }
 0x1f4   :  { %v233_v57 = vpop.f32.mrb[0].mxu1 }
 0x1f5   :  { %v234_v58 = vadd.f32 %v255_v56, %v233_v57  ;;  %v359_v59 = vpop.f32.mrb[1].mxu1 }
 0x1f7   :  { %237 = vst [vmem:[#allocation7] sm:$0xff] %v234_v58 }
 0x1f8   :  { %471 = shalt.err (!%p468_p6)
}
 0x1f9   :  { %s472_s26 = scalar_lea.hbm %s592_s5, 128 }
 0x1fa   :  { %p473_p7 = scmp.ne.s32.totalorder %s592_s5, %s472_s26  ;;  %p476_p8 = scmp.lt.u32.totalorder %s472_s26, %s592_s5 }
 0x1fc   :  { %p478_p9 = pnand %p476_p8, %p473_p7 }
 0x1fe   :  { %481 = shalt.err (!%p478_p9)
}
 0x1ff   :  { %247 = dma.vmem_to_hbm [thread:$0]  %s245_s23, 128, %s592_s5, [#allocation4]  }
 0x200   :  { %486 = dma.done.wait [#allocation4], 128  }
 0x201   :  { %487 = vsyncadd [#allocation4], 4294967168 }
 0x202   :  { %251 = vsyncpa [#allocation3], 1 }
 0x203   :  { %252 = vsyncpa [#allocation6], 1 }
 0x204   :  { %253 = vsyncpa [#allocation4], 1 }

</bundles_post_ra>
